<compile_context>
chip_gen: v7x
topology: tpu7x:2x2x1
jax: 0.10.0
libtpu: 0.0.40
codegen_flags: <defaults>
</compile_context>

<pallas_src>
import functools

import jax
import jax.numpy as jnp
from jax import lax
from jax.experimental import pallas as pl
from jax.experimental.pallas import tpu as pltpu


def _round_up(x, m):
    return ((x + m - 1) // m) * m


def _cdiv(a, b):
    return -(-a // b)


def _pick_tile_l(l_out, c_p, in_itemsize, out_itemsize):
    """Largest lane-dense output tile (multiple of 128, <= 1024) whose
    double-buffered VMEM footprint stays under ~44 MiB (fits v7x's 64 MiB)."""
    tile = min(1024, _round_up(l_out, 128))
    w_bytes = 2 * (3 * c_p * c_p) * in_itemsize + 2 * c_p * 4  # resident w + bias
    while tile > 128:
        blk = 2 * (2 * c_p * tile * in_itemsize + c_p * tile * out_itemsize)
        if blk + w_bytes <= 44 * 1024 * 1024:
            break
        tile //= 2
    return tile


def _conv1d_s2_kernel(x2_ref, bnd_ref, w12_ref, w0_ref, b_ref, o_ref, *, c_p):
    # x2_ref : (2*Cp, TL)   rows [0:Cp]   = x[:, 2t]     (even samples)
    #                       rows [Cp:2Cp] = x[:, 2t+1]   (odd samples, zero
    #                                                     right-padded for odd L)
    # bnd_ref: (Cp, 1)      x[:, 2*j*TL - 1]  (zeros at j == 0 == conv left pad)
    # w12_ref: (Cp, 2*Cp)   [ w[:, :, 1] | w[:, :, 2] ]  fused taps
    # w0_ref : (Cp, Cp)     w[:, :, 0]                    tap for x[:, 2t-1]
    # b_ref  : (Cp, 1)      bias (f32)
    # o_ref  : (Cp, TL)
    x2 = x2_ref[...]
    xo = x2[c_p:, :]                    # odd samples  x[:, 2t+1]
    prev = bnd_ref[...]                 # boundary column for this tile

    # Build the x[:, 2t-1] tap: shift the odd stream right by one lane (XLU,
    # nearly free next to the MXU) and inject the boundary column into lane 0
    # with a cheap (1, TL) lane mask (no full-tile iota).
    rolled = pltpu.roll(xo, shift=1, axis=1)
    lane0 = lax.broadcasted_iota(jnp.int32, (1, xo.shape[1]), 1) == 0
    xm1 = jnp.where(lane0, prev, rolled)

    # Fused taps 1..2 in one K=2*Cp dot; tap 0 separately.  f32 accumulation.
    acc = jnp.dot(w12_ref[...], x2, preferred_element_type=jnp.float32)
    acc = acc + jnp.dot(w0_ref[...], xm1, preferred_element_type=jnp.float32)
    o_ref[...] = (acc + b_ref[...]).astype(o_ref.dtype)


def downsample1d(x, weight, bias, *, tile_l=None, compute_dtype=None):
    """Conv1d(dim, dim, kernel=3, stride=2, padding=1) forward.

    x:      (N, C, L)   float32
    weight: (C, C, 3)   float32  (out_ch, in_ch, kernel)
    bias:   (C,)        float32
    returns (N, C, L_out),  L_out = (L + 2 - 3)//2 + 1

    compute_dtype=jnp.bfloat16 stores the operands in bf16 in HBM (halved DMA,
    native MXU operands); accumulation stays f32.
    """
    N, C, L = x.shape
    K, stride, pad = 3, 2, 1
    L_out = (L + 2 * pad - K) // stride + 1

    C_p = _round_up(C, 8)                                  # sublane alignment
    out_dt = jnp.dtype(x.dtype)
    in_dt = jnp.dtype(compute_dtype) if compute_dtype is not None else out_dt

    if tile_l is None:
        tile_l = _pick_tile_l(L_out, C_p, in_dt.itemsize, out_dt.itemsize)
    tile_l = max(128, _round_up(tile_l, 128))
    num_l_tiles = _cdiv(L_out, tile_l)

    # ---- wrapper glue: even/odd de-interleave into ONE combined array ------
    # (allow_input_fusion lets XLA fuse this producer into the operand DMA)
    xe = x[:, :, 0::2]                                     # x[:, 2t]   (L_out cols)
    xo = x[:, :, 1::2]                                     # x[:, 2t+1] (L_out or L_out-1)

    def _pad_cl(a):
        return jnp.pad(a, ((0, 0), (0, C_p - a.shape[1]), (0, L_out - a.shape[2])))

    xe_p = _pad_cl(xe)
    xo_p = _pad_cl(xo)                                     # zero right-pad == conv pad
    x2 = jnp.concatenate([xe_p, xo_p], axis=1).astype(in_dt)   # (N, 2*Cp, L_out)

    # Per-tile boundary column x[:, 2*j*tile_l - 1] (zeros at j == 0).  Shaped
    # (N, n_tiles, Cp, 1) so the kernel block is a plain (Cp, 1) column and
    # both grid axes can stay "parallel" (no sequential carry).
    bnd = jnp.zeros((N, num_l_tiles, C_p, 1), in_dt)
    if num_l_tiles > 1:
        cols = xo_p[:, :, tile_l - 1:(num_l_tiles - 1) * tile_l:tile_l]
        bnd = bnd.at[:, 1:, :, 0].set(jnp.transpose(cols, (0, 2, 1)).astype(in_dt))

    # Weights: taps 1..2 fused into one (Cp, 2*Cp) matrix; tap 0 separate.
    # Zero padding in the unused rows/cols keeps padded channels inert.
    w12 = jnp.zeros((C_p, 2 * C_p), in_dt)
    w12 = w12.at[:C, :C].set(weight[:, :, 1].astype(in_dt))          # * x[2t]
    w12 = w12.at[:C, C_p:C_p + C].set(weight[:, :, 2].astype(in_dt))  # * x[2t+1]
    w0 = jnp.zeros((C_p, C_p), in_dt)
    w0 = w0.at[:C, :C].set(weight[:, :, 0].astype(in_dt))            # * x[2t-1]
    b = jnp.pad(bias.astype(jnp.float32), (0, C_p - C)).reshape(C_p, 1)

    # ---- VMEM budget / compiler params --------------------------------------
    vmem_est = (2 * (2 * C_p * tile_l * in_dt.itemsize + C_p * tile_l * out_dt.itemsize)
                + 2 * (3 * C_p * C_p) * in_dt.itemsize
                + 2 * C_p * 4
                + 2 * num_l_tiles * C_p * in_dt.itemsize)
    vmem_limit = int(min(48 * 1024 * 1024, max(32 * 1024 * 1024, vmem_est + (4 << 20))))

    flops = 2 * N * C_p * (3 * C_p) * num_l_tiles * tile_l
    bytes_accessed = (x2.size * x2.dtype.itemsize + bnd.size * bnd.dtype.itemsize
                      + w12.size * w12.dtype.itemsize + w0.size * w0.dtype.itemsize
                      + b.size * b.dtype.itemsize
                      + N * C_p * L_out * out_dt.itemsize)

    kernel = functools.partial(_conv1d_s2_kernel, c_p=C_p)

    out_p = pl.pallas_call(
        kernel,
        out_shape=jax.ShapeDtypeStruct((N, C_p, L_out), out_dt),
        grid=(N, num_l_tiles),
        in_specs=[
            pl.BlockSpec((None, 2 * C_p, tile_l), lambda n, j: (n, 0, j)),
            pl.BlockSpec((None, None, C_p, 1), lambda n, j: (n, j, 0, 0)),
            pl.BlockSpec((C_p, 2 * C_p), lambda n, j: (0, 0)),   # resident
            pl.BlockSpec((C_p, C_p), lambda n, j: (0, 0)),       # resident
            pl.BlockSpec((C_p, 1), lambda n, j: (0, 0)),         # resident
        ],
        out_specs=pl.BlockSpec((None, C_p, tile_l), lambda n, j: (n, 0, j)),
        compiler_params=pltpu.CompilerParams(
            # No sequential carry -> both axes are safe to shard across cores.
            dimension_semantics=("parallel", "parallel"),
            vmem_limit_bytes=vmem_limit,
            allow_input_fusion=[True, False, False, False, False],
        ),
        cost_estimate=pl.CostEstimate(
            flops=int(flops), transcendentals=0,
            bytes_accessed=int(bytes_accessed)),
    )(x2, bnd, w12, w0, b)

    # Length is already exact (Pallas clips the final partial block); only the
    # channel padding (C % 8 != 0) needs a slice.
    return out_p if C_p == C else out_p[:, :C, :]


def _reference_conv1d(x, weight, bias):
    # XLA reference: Conv1d stride=2, padding=1 (HIGHEST = true f32 accumulation)
    out = lax.conv_general_dilated(
        x, weight,
        window_strides=(2,),
        padding=((1, 1),),
        dimension_numbers=("NCH", "OIH", "NCH"),
        precision=lax.Precision.HIGHEST,
    )
    return out + bias[None, :, None]


if __name__ == "__main__":
    key = jax.random.PRNGKey(0)
    k_x, k_w, k_b, k_x2, k_w2, k_b2 = jax.random.split(key, 6)

    # ---- primary small case: batch=2, dim (channels)=4, length=16 ----------
    N, C, L = 2, 4, 16
    x = jax.random.normal(k_x, (N, C, L), dtype=jnp.float32)
    fan_in = C * 3
    bound = 1.0 / (fan_in ** 0.5)
    weight = jax.random.uniform(k_w, (C, C, 3), jnp.float32, -bound, bound)
    bias = jax.random.uniform(k_b, (C,), jnp.float32, -bound, bound)

    out = jax.block_until_ready(downsample1d(x, weight, bias))
    ref = jax.block_until_ready(_reference_conv1d(x, weight, bias))
    assert out.shape == ref.shape, (out.shape, ref.shape)
    assert jnp.allclose(out, ref, atol=1e-4, rtol=1e-4), "mismatch vs XLA conv"

    # ---- odd sequence length exercises the right-edge zero tap -------------
    x_odd = jax.random.normal(k_x, (N, C, L + 1), dtype=jnp.float32)
    out_odd = jax.block_until_ready(downsample1d(x_odd, weight, bias))
    ref_odd = jax.block_until_ready(_reference_conv1d(x_odd, weight, bias))
    assert out_odd.shape == ref_odd.shape, (out_odd.shape, ref_odd.shape)
    assert jnp.allclose(out_odd, ref_odd, atol=1e-4, rtol=1e-4), "mismatch (odd L)"

    # ---- multi-tile path: forced tile_l=128, 5 L-tiles (last partial), N=2,
    #      C a multiple of 8 (no channel padding fast path), boundary columns.
    C_mt, L_mt = 8, 1034                      # L_out = 517
    x_mt = jax.random.normal(k_x2, (N, C_mt, L_mt), dtype=jnp.float32)
    bound_mt = 1.0 / ((C_mt * 3) ** 0.5)
    w_mt = jax.random.uniform(k_w2, (C_mt, C_mt, 3), jnp.float32, -bound_mt, bound_mt)
    b_mt = jax.random.uniform(k_b2, (C_mt,), jnp.float32, -bound_mt, bound_mt)
    out_mt = jax.block_until_ready(downsample1d(x_mt, w_mt, b_mt, tile_l=128))
    ref_mt = jax.block_until_ready(_reference_conv1d(x_mt, w_mt, b_mt))
    assert out_mt.shape == ref_mt.shape, (out_mt.shape, ref_mt.shape)
    assert jnp.allclose(out_mt, ref_mt, atol=1e-4, rtol=1e-4), "mismatch (multi-tile)"

    # ---- bf16 operand path (halved HBM traffic), loosened tolerance --------
    out_bf = jax.block_until_ready(
        downsample1d(x_mt, w_mt, b_mt, tile_l=128, compute_dtype=jnp.bfloat16))
    assert out_bf.shape == ref_mt.shape
    assert jnp.allclose(out_bf, ref_mt, atol=5e-2, rtol=5e-2), "mismatch (bf16)"

    print("KERNEL_OK")
</pallas_src>

<mosaic_0001>
module attributes {stable_mosaic.version = 11 : i64} {
  func.func @_conv1d_s2_kernel(%arg0: i32, %arg1: i32, %arg2: memref<1x16x128xf32, #tpu.memory_space<vmem>>, %arg3: memref<1x1x8x1xf32, #tpu.memory_space<vmem>>, %arg4: memref<8x16xf32, #tpu.memory_space<vmem>>, %arg5: memref<8x8xf32, #tpu.memory_space<vmem>>, %arg6: memref<8x1xf32, #tpu.memory_space<vmem>>, %arg7: memref<1x8x128xf32, #tpu.memory_space<vmem>>) attributes {dimension_semantics = [#tpu.dimension_semantics<parallel>, #tpu.dimension_semantics<parallel>], iteration_bounds = array<i64: 2, 1>, scalar_prefetch = 0 : i64, scratch_operands = 0 : i64, tpu.core_type = #tpu.core_type<tc>, window_params = [{transform_indices = @transform_0, window_bounds = array<i64: 1, 16, 128>}, {transform_indices = @transform_1, window_bounds = array<i64: 1, 1, 8, 1>}, {pipeline_mode = #tpu.pipeline_mode<synchronous>, transform_indices = @transform_2, window_bounds = array<i64: 8, 16>}, {pipeline_mode = #tpu.pipeline_mode<synchronous>, transform_indices = @transform_3, window_bounds = array<i64: 8, 8>}, {pipeline_mode = #tpu.pipeline_mode<synchronous>, transform_indices = @transform_4, window_bounds = array<i64: 8, 1>}, {transform_indices = @transform_5, window_bounds = array<i64: 1, 8, 128>}]} {
    %c0 = arith.constant 0 : index
    %c0_0 = arith.constant 0 : index
    %c0_1 = arith.constant 0 : index
    %0 = vector.load %arg2[%c0, %c0_0, %c0_1] : memref<1x16x128xf32, #tpu.memory_space<vmem>>, vector<1x16x128xf32>
    %1 = vector.shape_cast %0 : vector<1x16x128xf32> to vector<16x128xf32>
    %2 = vector.extract_strided_slice %1 {offsets = [8, 0], sizes = [8, 128], strides = [1, 1]} : vector<16x128xf32> to vector<8x128xf32>
    %c0_2 = arith.constant 0 : index
    %c0_3 = arith.constant 0 : index
    %c0_4 = arith.constant 0 : index
    %c0_5 = arith.constant 0 : index
    %3 = vector.load %arg3[%c0_2, %c0_3, %c0_4, %c0_5] : memref<1x1x8x1xf32, #tpu.memory_space<vmem>>, vector<1x1x8x1xf32>
    %4 = vector.shape_cast %3 : vector<1x1x8x1xf32> to vector<8x1xf32>
    %c1_i32 = arith.constant 1 : i32
    %5 = tpu.dynamic_rotate %2 by %c1_i32 dim 1 : vector<8x128xf32>, i32 -> vector<8x128xf32>
    %6 = tpu.iota {dimensions = array<i32: 1>} : vector<1x128xi32>
    %c0_i32 = arith.constant 0 : i32
    %7 = vector.broadcast %c0_i32 : i32 to vector<1x128xi32>
    %8 = arith.cmpi eq, %6, %7 : vector<1x128xi32>
    %9 = vector.shape_cast %8 : vector<1x128xi1> to vector<1x128xi1>
    %10 = vector.broadcast %9 : vector<1x128xi1> to vector<8x128xi1>
    %11 = vector.shape_cast %4 : vector<8x1xf32> to vector<8x1xf32>
    %12 = vector.broadcast %11 : vector<8x1xf32> to vector<8x128xf32>
    %13 = arith.select %10, %12, %5 : vector<8x128xi1>, vector<8x128xf32>
    %c0_6 = arith.constant 0 : index
    %c0_7 = arith.constant 0 : index
    %14 = vector.load %arg4[%c0_6, %c0_7] : memref<8x16xf32, #tpu.memory_space<vmem>>, vector<8x16xf32>
    %cst = arith.constant dense<0.000000e+00> : vector<8x128xf32>
    %15 = tpu.matmul %14, %1, %cst {dimension_numbers = #tpu.dot_dimension_numbers<[1], [0], [0], [1], [0, 0, 1, 1], [], []>} : vector<8x16xf32>, vector<16x128xf32>, vector<8x128xf32> -> vector<8x128xf32>
    %c0_8 = arith.constant 0 : index
    %c0_9 = arith.constant 0 : index
    %16 = vector.load %arg5[%c0_8, %c0_9] : memref<8x8xf32, #tpu.memory_space<vmem>>, vector<8x8xf32>
    %cst_10 = arith.constant dense<0.000000e+00> : vector<8x128xf32>
    %17 = tpu.matmul %16, %13, %cst_10 {dimension_numbers = #tpu.dot_dimension_numbers<[1], [0], [0], [1], [0, 0, 1, 1], [], []>} : vector<8x8xf32>, vector<8x128xf32>, vector<8x128xf32> -> vector<8x128xf32>
    %18 = arith.addf %15, %17 : vector<8x128xf32>
    %c0_11 = arith.constant 0 : index
    %c0_12 = arith.constant 0 : index
    %19 = vector.load %arg6[%c0_11, %c0_12] : memref<8x1xf32, #tpu.memory_space<vmem>>, vector<8x1xf32>
    %20 = vector.broadcast %19 : vector<8x1xf32> to vector<8x128xf32>
    %21 = arith.addf %18, %20 : vector<8x128xf32>
    %c0_13 = arith.constant 0 : index
    %c0_14 = arith.constant 0 : index
    %c0_15 = arith.constant 0 : index
    %22 = vector.load %arg7[%c0_13, %c0_14, %c0_15] : memref<1x8x128xf32, #tpu.memory_space<vmem>>, vector<1x8x128xf32>
    %23 = vector.shape_cast %22 : vector<1x8x128xf32> to vector<8x128xf32>
    %24 = vector.shape_cast %21 : vector<8x128xf32> to vector<1x8x128xf32>
    tpu.vector_store %arg7[%c0_13, %c0_14, %c0_15], %24 {strides = array<i32>} : memref<1x8x128xf32, #tpu.memory_space<vmem>>, vector<1x8x128xf32>,
    return
  }
  func.func @transform_0(%arg0: i32, %arg1: i32) -> (i32, i32, i32) {
    %c0_i32 = arith.constant 0 : i32
    %c0_i32_0 = arith.constant 0 : i32
    return %arg0, %c0_i32, %arg1 : i32, i32, i32
  }
  func.func @transform_1(%arg0: i32, %arg1: i32) -> (i32, i32, i32, i32) {
    %c0_i32 = arith.constant 0 : i32
    %c0_i32_0 = arith.constant 0 : i32
    %c0_i32_1 = arith.constant 0 : i32
    return %arg0, %arg1, %c0_i32, %c0_i32_0 : i32, i32, i32, i32
  }
  func.func @transform_2(%arg0: i32, %arg1: i32) -> (i32, i32) {
    %c0_i32 = arith.constant 0 : i32
    %c0_i32_0 = arith.constant 0 : i32
    %c0_i32_1 = arith.constant 0 : i32
    return %c0_i32, %c0_i32_0 : i32, i32
  }
  func.func @transform_3(%arg0: i32, %arg1: i32) -> (i32, i32) {
    %c0_i32 = arith.constant 0 : i32
    %c0_i32_0 = arith.constant 0 : i32
    %c0_i32_1 = arith.constant 0 : i32
    return %c0_i32, %c0_i32_0 : i32, i32
  }
  func.func @transform_4(%arg0: i32, %arg1: i32) -> (i32, i32) {
    %c0_i32 = arith.constant 0 : i32
    %c0_i32_0 = arith.constant 0 : i32
    %c0_i32_1 = arith.constant 0 : i32
    return %c0_i32, %c0_i32_0 : i32, i32
  }
  func.func @transform_5(%arg0: i32, %arg1: i32) -> (i32, i32, i32) {
    %c0_i32 = arith.constant 0 : i32
    %c0_i32_0 = arith.constant 0 : i32
    return %arg0, %c0_i32, %arg1 : i32, i32, i32
  }
}

</mosaic_0001>

<bundles_post_ra>
// kernel: tpu_custom_call.1
= control target key start
LH: loop header
LB: loop body
LE: loop exit
PB: predicated region body
PF: predicated region fallthrough
CT: control target
= control target key end

     0   :  { %10 = vsyncpa [#allocation3], 0  ;;  %s892_s0 = inlined_call_operand.vmem [shape: f32[2,16,8], index: 0, kind: input, shape index: {}]   ;;  %s893_s1 = inlined_call_operand.vmem [shape: f32[2,1,8,1], index: 1, kind: input, shape index: {}]   ;;  %s894_s2 = inlined_call_operand.vmem [shape: f32[8,16], index: 2, kind: input, shape index: {}]   ;;  %s895_s3 = inlined_call_operand.vmem [shape: f32[8,8], index: 3, kind: input, shape index: {}]   ;;  %s896_s4 = inlined_call_operand.vmem [shape: f32[8,1], index: 4, kind: input, shape index: {}]   ;;  %s897_s5 = inlined_call_operand.hbm [shape: f32[2,8,8], index: 5, kind: output, shape index: {}]  }
   0x1   :  { %12 = vsyncpa [#allocation3 + $0x1], 0  ;;  %s768_s18 = smov 0   ;;  %s770_s19 = smov 0  }
   0x2   :  { %s772_s20 = smov 0   ;;  %s774_s21 = smov 0  }
   0x3   :  { %s776_s22 = smov 0   ;;  %s778_s23 = smov 0  }
   0x4 LB: > { %s554_s24 = sadd.s32 4294967295, %s730_s23   ;;  %s555_s25 = sadd.s32 4294967294, %s730_s23   ;;  %s730_s23 = sphi %s778_s23, %s18_s23   ;;  %s726_s22 = sphi %s776_s22, %s904_s22   ;;  %s722_s21 = sphi %s774_s21, %s903_s21   ;;  %s718_s20 = sphi %s772_s20, %s902_s20   ;;  %s714_s19 = sphi %s770_s19, %s901_s19   ;;  %s710_s18 = sphi %s768_s18, %s900_s18  }
   0x5   : > { %s30_s26 = sadd.s32 1, %s726_s22  ;;  %s158_s27 = sadd.s32 1, %s718_s20 }
   0x6   : > { %p32_p0 = scmp.ge.s32.totalorder %s30_s26, 2  ;;  %p168_p1 = scmp.ne.s32.totalorder %s718_s20, %s714_s19 }
   0x7   : > { %p169_p2 = scmp.eq.s32.totalorder %s554_s24, 1  ;;  %p174_p3 = scmp.ne.s32.totalorder %s714_s19, %s710_s18 }
   0x8   : > { %s906_s26 = smov (%p32_p0, %s30_s26), 0  ;;  %p175_p5 = scmp.eq.s32.totalorder %s555_s25, 1 }
   0x9   : > { %p808_p4 = por %p169_p2, %p168_p1  ;;  %s153_s29 = ssub.s32 %s726_s22, %s906_s26 }
   0xa   : > { %p558_p6 = scmp.ge.s32.totalorder %s730_s23, 1  ;;  %p156_p7 = scmp.eq.s32.totalorder %s153_s29, 0 }
   0xb   : > { %p815_p8 = por %p175_p5, %p174_p3  ;;  %p223_p9 = scmp.lt.s32.totalorder %s730_s23, 3 }
   0xc   : > { %s821_s6 = scalar_select %p156_p7, %s718_s20, %s158_s27  }
   0xd   : > { %p224_p10 = pnand %p558_p6, %p223_p9 }
   0xe   : > { %p261_p11 = scmp.lt.s32.totalorder (!%p224_p10), %s722_s21, 1  ;;  %v732_v0 = vmov (!%p224_p10), 0   ;;  %v733_v4 = vmov (!%p224_p10), 0.0|0.0   ;;  %s734_s16 = smov (!%p224_p10), 1   ;;  %v735_v6 = vmov (!%p224_p10), 0.0   ;;  %v292_v7 = vld [vmem:[%s894_s2] sm:$0xff] (!%p224_p10)  ;;  %v281_v9 = vlaneseq (!%p224_p10) }
   0xf   : > { %227 = sbr.rel (%p224_p10) target bundleno = 391 (0x187), region = 40  ;;  %650 = vset.pattern.permute.xlu0 (!%p224_p10), %v732_v0  ;;  %651 = vset.pattern.permute.xlu1 (!%p224_p10), %v732_v0  ;;  %vm368_vm0 = vcmask (!%p224_p10), 130048   ;;  %vm736_vm1 = vmmov (!%p224_p10), 0   ;;  %v442_v8 = vld [vmem:[%s896_s4] sm:$0xff] (!%p224_p10)  ;;  %vm294_vm3 = vcmask (!%p224_p10), 64512   ;;  %s566_s10 = sshll.u32 (!%p224_p10), %s722_s21, 7 }
  0x10   : > { %587 = vmatprep.subr.bf16.mxu1 (!%p224_p10), %v733_v4  ;;  %575 = vmatprep.subr.mxu0 (!%p224_p10), %v735_v6  ;;  %v282_v10 = vand.u32 (!%p224_p10), 127, %v281_v9  ;;  %v293_v13 = vld [vmem:[%s895_s3] sm:$0xff] (!%p224_p10) }
  0x11   : > { %584 = vmatprep.mubr.msk.f32.mxu1 (!%p224_p10), %vm736_vm1, %v735_v6  ;;  %577 = vmatprep.mubr.msk.f32.mxu0 (!%p224_p10), %vm736_vm1, %v735_v6 }
  0x12   : > { %445 = vperm.xlu1 (!%p224_p10), %651, %v442_v8   ;;  %vm283_vm2 = vcmp.eq.s32.totalorder (!%p224_p10), %v282_v10, 0 }
  0x16   : > { %s262_s7 = scalar_select %p261_p11, %s722_s21, 1 }
  0x17   : > { %s737_s21 = smov [#allocation2]  }
  0x18   : > { %s562_s8 = sshll.u32 %s262_s7, 3  ;;  %s569_s9 = sshll.u32 %s262_s7, 4 }
  0x19   : > { %s275_s12 = scalar_lea.vmem %s893_s1, %s562_s8  ;;  %s268_s15 = scalar_lea.vmem %s892_s0, %s569_s9 }
  0x1a   : > { %v278_v1 = vld [vmem:[%s275_s12] sm:$0xff]  ;;  %v277_v2 = vld [vmem:[%s268_s15 + $0x8] sm:$0xff]  ;;  %s258_s8 = sand.u32 1, %s714_s19   ;;  %s656_s24 = sshll.u32 %s737_s21, 4  ;;  %s657_s24 = int_to_ptr.vmem [resolvable:$false] %s656_s24 }
  0x1b   : > { %v276_v3 = vld [vmem:[%s268_s15] sm:$0xff]  ;;  %288 = vperm.xlu0 %650, %v278_v1   ;;  %s559_s9 = sshll.u32 %s258_s8, 3  ;;  %s845_s15 = scalar_lea.hbm %s897_s5, %s566_s10 }
  0x1c   : > { %v588_v5 = vpack.c.bf16 %v277_v2, %v276_v3  ;;  %s260_s11 = scalar_lea.vmem [#allocation2], %s559_s9  ;;  %s658_s25 = scalar_lea.vmem %s657_s24, 256 }
  0x1d   : > { %s465_s12 = sshll.u32 %s260_s11, 4  ;;  %s847_s12 = int_to_ptr.vmem [resolvable:$true] %s465_s12 }
  0x1e   : > { %589 = vmatpush3.bf16.msra.mxu1 %v588_v5  ;;  %s652_s17 = scalar_lea.vmem %s847_s12, 128  ;;  %p659_p1 = scmp.lt.s32.totalorder %s847_s12, %s657_s24 }
  0x1f   : > { %279 = vrot.lane.b32.xlu0 %v277_v2, %s734_s16  ;;  %s451_s16 = scalar_lea.sflag [#allocation3], %s258_s8  ;;  %p653_p12 = scmp.ne.s32.totalorder %s847_s12, %s652_s17 }
  0x20   : > { %p660_p2 = scmp.lt.s32.totalorder %s658_s25, %s652_s17 }
  0x21   : > { %585 = vmatmul.mubr.msk.f32.vlgmr.msra.gmra.mrb[0].mxu1 %vm368_vm0, %v292_v7  ;;  %p654_p13 = pnand %p653_p12, %p808_p4 }
  0x22   : > { %p661_p3 = por %p660_p2, %p659_p1 }
  0x23   : > { %p655_p0 = pneg %p654_p13 }
  0x25   : > { %p662_p5 = pnand %p661_p3, %p655_p0 }
  0x91   : > { %v446_v18 = vpop.permute.xlu1 %445 }
  0x9a   : > { %v289_v11 = vpop.permute.xlu0 %288 }
  0x9e   : > { %v280_v12 = vpop.permute.xlu0 %279 }
  0x9f   : > { %v291_v14 = vsel %vm283_vm2, %v289_v11, %v280_v12 }
  0xa0   : > { %576 = vmatpush3.msra.mxu0 %v291_v14 }
  0xa1   : > { %578 = vmatmul.mubr.msk.f32.vlgmr.msra.gmra.mrb[0].mxu0 %vm294_vm3, %v293_v13 }
  0xf4   : > { %v438_v15 = vpop.f32.mrb[0].mxu1 }
  0xf5   : > { %v586_v16 = vpop.f32.mrb[1].mxu1 }
 0x174   : > { %v364_v17 = vpop.f32.mrb[0].mxu0 }
 0x175   : > { %v439_v19 = vadd.f32 %v438_v15, %v364_v17  ;;  %v579_v20 = vpop.f32.mrb[1].mxu0 }
 0x177   : > { %v448_v21 = vadd.f32 %v446_v18, %v439_v19 }
 0x179   : > { %449 = vst [vmem:[%s260_s11] sm:$0xff] %v448_v21 }
 0x17a   : > { %665 = shalt.err (!%p662_p5)
}
 0x17b   : > { %s666_s27 = scalar_lea.hbm %s845_s15, 128  ;;  %s670_s8 = scalar_lea.hbm %s897_s5, 256 }
 0x17c   : > { %p667_p6 = scmp.ne.s32.totalorder %s845_s15, %s666_s27  ;;  %p671_p10 = scmp.lt.u32.totalorder %s845_s15, %s897_s5 }
 0x17d   : > { %p672_p11 = scmp.lt.u32.totalorder %s670_s8, %s666_s27  ;;  %p674_p13 = scmp.lt.u32.totalorder %s666_s27, %s845_s15 }
 0x17e   : > { %p668_p7 = pnand %p667_p6, %p808_p4 }
 0x17f   : > { %p673_p12 = por %p672_p11, %p671_p10 }
 0x180   : > { %p669_p9 = pneg %p668_p7 }
 0x181   : > { %p675_p0 = por %p674_p13, %p673_p12 }
 0x183   : > { %p676_p1 = pnand %p675_p0, %p669_p9 }
 0x185   : > { %679 = shalt.err (!%p676_p1)
}
 0x186   : > { %590 = dma.vmem_to_hbm [thread:$0]  (%p808_p4), %s847_s12, 128, %s845_s15, %s451_s16  }
 0x187 PF: > { %p596_p2 = scmp.ge.s32.totalorder %s730_s23, 2  ;;  %s477_s11 = sand.u32 1, %s710_s18  }
 0x188   : > { %s478_s13 = scalar_lea.sflag [#allocation3], %s477_s11 }
 0x189   : > { %p593_p3 = pnand %p596_p2, %p815_p8 }
 0x18b   : > { %705 = dma.done.wait (!%p593_p3), %s478_s13, 128  }
 0x18c   : > { %707 = vsyncadd (!%p593_p3), %s478_s13, 4294967168  ;;  %s18_s23 = sadd.s32 1, %s730_s23   ;;  %s900_s18 = smov %s714_s19 }
 0x18d   : > { %p15_p5 = scmp.ge.s32.totalorder %s18_s23, 4   ;;  %s901_s19 = smov %s718_s20 }
 0x18e   : > { %s902_s20 = smov %s821_s6  ;;  %s903_s21 = smov %s726_s22 }
 0x18f   : > { %s904_s22 = smov %s906_s26  ;;  %17 = sbr.rel (!%p15_p5) target bundleno = 4 (0x4), region = 78 }
 0x196   :  { %483 = vsyncpa [#allocation3], 1 }
 0x197   :  { %485 = vsyncpa [#allocation3 + $0x1], 1 }

</bundles_post_ra>
